<compile_context>
chip_gen: v7x
topology: tpu7x:2x2x1
jax: 0.10.0
libtpu: 0.0.40
codegen_flags: <defaults>
</compile_context>

<pallas_src>
import functools

import jax
import jax.numpy as jnp
import numpy as np
from jax import lax
from jax.experimental import pallas as pl
from jax.experimental.pallas import tpu as pltpu


def _cdiv(a, b):
    return -(-a // b)


def _round_up(x, m):
    return ((x + m - 1) // m) * m


def _proto_contrast_kernel(p_ref, feat_ref, labels_ref, out_ref,
                           *, n_rows, inv_tau, ignore_index):
    tn = labels_ref.shape[1]
    C = p_ref.shape[0]
    A = feat_ref.shape[1]

    f = feat_ref[...]                                   # (tn, A) f32 or bf16
    p = p_ref[...]                                      # (C, A), unit-norm rows, same dtype as f

    # Class-major raw similarity on the MXU (same contraction pattern as q @ k^T).
    raw = lax.dot_general(p, f, (((1,), (1,)), ((), ())),
                          preferred_element_type=jnp.float32)            # (C, tn)

    # Per-pixel squared norm as a lane-dense row via an MXU matvec (avoids a
    # sparse (tn, 1) layout + transpose).  sumsq path kept in f32.
    f32 = f.astype(jnp.float32)
    fsq = f32 * f32                                                      # (tn, A)
    ones8 = jnp.ones((8, A), jnp.float32)
    sumsq = lax.dot_general(ones8, fsq, (((1,), (1,)), ((), ())),
                            preferred_element_type=jnp.float32)[0:1, :]  # (1, tn)

    # rsqrt(max(s, 1e-24)) == 1 / max(sqrt(s), 1e-12)  (F.normalize eps); fold 1/tau.
    scale = lax.rsqrt(jnp.maximum(sumsq, 1e-24)) * inv_tau               # (1, tn)
    logits = raw * scale                                                 # (C, tn)

    # Validity: ignore_index AND in-range (last block may overrun -> tail reads
    # are undefined and must be masked out).
    labels = labels_ref[...]                                             # (1, tn) int32
    row_in_tile = lax.broadcasted_iota(jnp.int32, (1, tn), 1)
    in_range = (pl.program_id(0) * tn + row_in_tile) < n_rows
    valid = (labels != ignore_index) & in_range                          # (1, tn)
    safe_labels = jnp.where(valid, labels, 0)

    # Per-pixel (per-column) log-softmax cross entropy along the class/sublane axis.
    m = jnp.max(logits, axis=0, keepdims=True)                           # (1, tn)
    z = logits - m
    lse = jnp.log(jnp.sum(jnp.exp(z), axis=0, keepdims=True))            # (1, tn)
    cls_idx = lax.broadcasted_iota(jnp.int32, (C, tn), 0)
    one_hot = (cls_idx == safe_labels).astype(jnp.float32)               # (C, tn)
    z_tgt = jnp.sum(one_hot * z, axis=0, keepdims=True)                  # (1, tn)
    # where (not multiply) so NaN/Inf in ignored / out-of-range columns never leaks.
    loss = jnp.where(valid, lse - z_tgt, 0.0)                            # (1, tn)

    partial_sum = jnp.sum(loss)
    partial_cnt = jnp.sum(valid.astype(jnp.float32))

    # Lane-dense per-tile partial block: row 0 = masked loss sum, row 1 = valid count.
    row = lax.broadcasted_iota(jnp.int32, out_ref.shape, 1)
    out_ref[...] = jnp.where(row == 0, partial_sum,
                             jnp.where(row == 1, partial_cnt, 0.0))


def prototype_contrastive_loss(Proto, feat, labels, *, tau, tile_n=2048,
                               feat_dtype=None, ignore_index=255):
    """Pallas implementation of PrototypeContrastiveLoss.forward (no pixel weights)."""
    N, A = feat.shape
    C, A2 = Proto.shape
    assert A == A2 and labels.shape == (N,)

    # Hoist Proto L2-normalization out of the kernel (constant across grid steps).
    p32 = Proto.astype(jnp.float32)
    p_norm = jnp.sqrt(jnp.sum(p32 * p32, axis=1, keepdims=True))
    p_unit = p32 / jnp.maximum(p_norm, 1e-12)                            # (C, A)

    # Optional reduced-precision compute path (e.g. jnp.bfloat16): halves feat
    # HBM traffic and VMEM; MXU accumulates in f32 either way.
    cdt = jnp.dtype(feat.dtype if feat_dtype is None else feat_dtype)
    if feat.dtype != cdt:
        feat = feat.astype(cdt)
    p_unit = p_unit.astype(cdt)

    labels2d = labels.reshape(1, N).astype(jnp.int32)

    # Tile selection:
    #  * cap the feat tile so a double-buffered tile stays well inside the scoped
    #    VMEM budget even on v7x (64 MiB VMEM / 32 MiB default scoped limit),
    #  * keep >= 2 grid steps when N allows so ("parallel",) uses both v7x TCs,
    #  * NO padding of N: the last block overruns and is masked in-kernel.
    max_tile_bytes = 8 * 1024 * 1024
    tn_cap = max(128, (max_tile_bytes // (A * cdt.itemsize)) // 128 * 128)
    tile_n_eff = max(128, min(int(tile_n), tn_cap))
    n_tiles = _cdiv(N, tile_n_eff)
    if N >= 256:
        n_tiles = max(n_tiles, 2)
    tn = _round_up(_cdiv(N, n_tiles), 128)
    num_tiles = _cdiv(N, tn)

    kernel = functools.partial(_proto_contrast_kernel, n_rows=N,
                               inv_tau=1.0 / float(tau),
                               ignore_index=int(ignore_index))

    partials = pl.pallas_call(
        kernel,
        out_shape=jax.ShapeDtypeStruct((num_tiles, 8, 128), jnp.float32),
        grid_spec=pltpu.PrefetchScalarGridSpec(
            num_scalar_prefetch=0,
            grid=(num_tiles,),
            in_specs=[
                pl.BlockSpec((C, A), lambda i: (0, 0)),    # unit-norm Proto (grid-constant, tiny)
                pl.BlockSpec((tn, A), lambda i: (i, 0)),   # feat tile (last block may overrun)
                pl.BlockSpec((1, tn), lambda i: (0, i)),   # lane-dense labels tile
            ],
            out_specs=pl.BlockSpec((1, 8, 128), lambda i: (i, 0, 0)),
        ),
        compiler_params=pltpu.CompilerParams(
            dimension_semantics=("parallel",)),
    )(p_unit, feat, labels2d)

    loss_sum = jnp.sum(partials[:, 0, 0])
    valid_cnt = jnp.sum(partials[:, 1, 0])
    # CrossEntropyLoss(ignore_index) mean reduction: sum over valid / #valid.
    # (If every label is ignore_index this is NaN, matching torch.)
    return (loss_sum / valid_cnt).astype(jnp.float32)


def _reference_loss(Proto, feat, labels, tau):
    f = feat / jnp.maximum(jnp.linalg.norm(feat, axis=1, keepdims=True), 1e-12)
    p = Proto / jnp.maximum(jnp.linalg.norm(Proto, axis=1, keepdims=True), 1e-12)
    logits = (f @ p.T) / tau
    valid = labels != 255
    logp = jax.nn.log_softmax(logits, axis=-1)
    safe = jnp.where(valid, labels, 0)
    tgt = jnp.take_along_axis(logp, safe[:, None], axis=1)[:, 0]
    return -jnp.sum(tgt * valid) / jnp.sum(valid)


if __name__ == "__main__":
    key = jax.random.PRNGKey(0)
    k1, k2, k3, k4 = jax.random.split(key, 4)

    # Shapes implied by the module docstring:
    #   B=2, H=16, W=16  ->  N = B*H*W = 512 pixels, feat_dim A = 32, classes C = 8
    B, H, W, A, C = 2, 16, 16, 32, 8
    N = B * H * W
    TAU = 0.1  # cfg.MODEL.CONTRAST.TAU

    Proto = jax.random.normal(k1, (C, A), dtype=jnp.float32)      # class means
    feat = jax.random.normal(k2, (N, A), dtype=jnp.float32)       # (BHW, A)
    labels = jax.random.randint(k3, (N,), 0, C, dtype=jnp.int32)  # (BHW,)
    ignore_mask = jax.random.uniform(k4, (N,)) < 0.1
    labels = jnp.where(ignore_mask, 255, labels)

    # 1) f32 path (exact semantics).
    loss = jax.block_until_ready(
        prototype_contrastive_loss(Proto, feat, labels, tau=TAU))
    ref = jax.block_until_ready(_reference_loss(Proto, feat, labels, TAU))
    np.testing.assert_allclose(np.asarray(loss), np.asarray(ref), rtol=1e-5, atol=1e-5)

    # 2) Ragged-tail path: N not divisible by the tile -> last block overruns,
    #    masked in-kernel (no pre-kernel pad copy).
    Nr = N - 12
    loss_r = jax.block_until_ready(
        prototype_contrastive_loss(Proto, feat[:Nr], labels[:Nr], tau=TAU))
    ref_r = jax.block_until_ready(_reference_loss(Proto, feat[:Nr], labels[:Nr], TAU))
    np.testing.assert_allclose(np.asarray(loss_r), np.asarray(ref_r), rtol=1e-5, atol=1e-5)

    # 3) bf16 feat compute path (half HBM traffic; f32 MXU accumulation).
    loss_bf16 = jax.block_until_ready(
        prototype_contrastive_loss(Proto, feat, labels, tau=TAU,
                                   feat_dtype=jnp.bfloat16))
    np.testing.assert_allclose(np.asarray(loss_bf16), np.asarray(ref),
                               rtol=5e-2, atol=5e-2)

    print("KERNEL_OK")
</pallas_src>

<mosaic_0001>
module attributes {stable_mosaic.version = 11 : i64} {
  func.func @_proto_contrast_kernel(%arg0: i32, %arg1: memref<8x32xf32, #tpu.memory_space<vmem>>, %arg2: memref<256x32xf32, #tpu.memory_space<vmem>>, %arg3: memref<1x256xi32, #tpu.memory_space<vmem>>, %arg4: memref<1x8x128xf32, #tpu.memory_space<vmem>>) attributes {dimension_semantics = [#tpu.dimension_semantics<parallel>], iteration_bounds = array<i64: 2>, scalar_prefetch = 0 : i64, scratch_operands = 0 : i64, tpu.core_type = #tpu.core_type<tc>, window_params = [{pipeline_mode = #tpu.pipeline_mode<synchronous>, transform_indices = @transform_0, window_bounds = array<i64: 8, 32>}, {transform_indices = @transform_1, window_bounds = array<i64: 256, 32>}, {transform_indices = @transform_2, window_bounds = array<i64: 1, 256>}, {transform_indices = @transform_3, window_bounds = array<i64: 1, 8, 128>}]} {
    %c0 = arith.constant 0 : index
    %c0_0 = arith.constant 0 : index
    %0 = vector.load %arg2[%c0, %c0_0] : memref<256x32xf32, #tpu.memory_space<vmem>>, vector<256x32xf32>
    %c0_1 = arith.constant 0 : index
    %c0_2 = arith.constant 0 : index
    %1 = vector.load %arg1[%c0_1, %c0_2] : memref<8x32xf32, #tpu.memory_space<vmem>>, vector<8x32xf32>
    %cst = arith.constant dense<0.000000e+00> : vector<8x256xf32>
    %2 = tpu.matmul %1, %0, %cst {dimension_numbers = #tpu.dot_dimension_numbers<[1], [1], [0], [0], [0, 0, 1, 0], [], []>} : vector<8x32xf32>, vector<256x32xf32>, vector<8x256xf32> -> vector<8x256xf32>
    %3 = arith.mulf %0, %0 : vector<256x32xf32>
    %cst_3 = arith.constant 1.000000e+00 : f32
    %4 = vector.broadcast %cst_3 : f32 to vector<8x32xf32>
    %cst_4 = arith.constant dense<0.000000e+00> : vector<8x256xf32>
    %5 = tpu.matmul %4, %3, %cst_4 {dimension_numbers = #tpu.dot_dimension_numbers<[1], [1], [0], [0], [0, 0, 1, 0], [], []>} : vector<8x32xf32>, vector<256x32xf32>, vector<8x256xf32> -> vector<8x256xf32>
    %6 = vector.extract_strided_slice %5 {offsets = [0, 0], sizes = [1, 256], strides = [1, 1]} : vector<8x256xf32> to vector<1x256xf32>
    %cst_5 = arith.constant 1.000000e-24 : f32
    %7 = vector.broadcast %cst_5 : f32 to vector<1x256xf32>
    %8 = arith.maximumf %6, %7 : vector<1x256xf32>
    %9 = math.rsqrt %8 : vector<1x256xf32>
    %cst_6 = arith.constant 1.000000e+01 : f32
    %10 = vector.broadcast %cst_6 : f32 to vector<1x256xf32>
    %11 = arith.mulf %9, %10 : vector<1x256xf32>
    %12 = vector.broadcast %11 : vector<1x256xf32> to vector<8x256xf32>
    %13 = arith.mulf %2, %12 : vector<8x256xf32>
    %c0_7 = arith.constant 0 : index
    %c0_8 = arith.constant 0 : index
    %14 = vector.load %arg3[%c0_7, %c0_8] : memref<1x256xi32, #tpu.memory_space<vmem>>, vector<1x256xi32>
    %15 = tpu.iota {dimensions = array<i32: 1>} : vector<1x256xi32>
    %c256_i32 = arith.constant 256 : i32
    %16 = arith.muli %arg0, %c256_i32 : i32
    %17 = vector.broadcast %16 : i32 to vector<1x256xi32>
    %18 = arith.addi %17, %15 : vector<1x256xi32>
    %c512_i32 = arith.constant 512 : i32
    %19 = vector.broadcast %c512_i32 : i32 to vector<1x256xi32>
    %20 = arith.cmpi slt, %18, %19 : vector<1x256xi32>
    %c255_i32 = arith.constant 255 : i32
    %21 = vector.broadcast %c255_i32 : i32 to vector<1x256xi32>
    %22 = arith.cmpi ne, %14, %21 : vector<1x256xi32>
    %23 = arith.andi %22, %20 : vector<1x256xi1>
    %c0_i32 = arith.constant 0 : i32
    %24 = vector.broadcast %c0_i32 : i32 to vector<1x256xi32>
    %25 = arith.select %23, %14, %24 : vector<1x256xi1>, vector<1x256xi32>
    %cst_9 = arith.constant dense<0xFF800000> : vector<256xf32>
    %26 = vector.multi_reduction <maximumf>, %13, %cst_9 [0] : vector<8x256xf32> to vector<256xf32>
    %27 = vector.shape_cast %26 : vector<256xf32> to vector<1x256xf32>
    %28 = vector.broadcast %27 : vector<1x256xf32> to vector<8x256xf32>
    %29 = arith.subf %13, %28 : vector<8x256xf32>
    %30 = math.exp %29 : vector<8x256xf32>
    %cst_10 = arith.constant dense<0.000000e+00> : vector<256xf32>
    %31 = vector.multi_reduction <add>, %30, %cst_10 [0] : vector<8x256xf32> to vector<256xf32>
    %32 = vector.shape_cast %31 : vector<256xf32> to vector<1x256xf32>
    %33 = math.log %32 : vector<1x256xf32>
    %34 = tpu.iota {dimensions = array<i32: 0>} : vector<8x256xi32>
    %35 = vector.broadcast %25 : vector<1x256xi32> to vector<8x256xi32>
    %36 = arith.cmpi eq, %34, %35 : vector<8x256xi32>
    %37 = arith.extui %36 : vector<8x256xi1> to vector<8x256xi32>
    %38 = arith.sitofp %37 : vector<8x256xi32> to vector<8x256xf32>
    %39 = arith.mulf %38, %29 : vector<8x256xf32>
    %cst_11 = arith.constant dense<0.000000e+00> : vector<256xf32>
    %40 = vector.multi_reduction <add>, %39, %cst_11 [0] : vector<8x256xf32> to vector<256xf32>
    %41 = vector.shape_cast %40 : vector<256xf32> to vector<1x256xf32>
    %42 = arith.subf %33, %41 : vector<1x256xf32>
    %cst_12 = arith.constant 0.000000e+00 : f32
    %43 = vector.broadcast %cst_12 : f32 to vector<1x256xf32>
    %44 = arith.select %23, %42, %43 : vector<1x256xi1>, vector<1x256xf32>
    %45 = vector.shape_cast %44 : vector<1x256xf32> to vector<1x1x256xf32>
    %cst_13 = arith.constant dense<0.000000e+00> : vector<1xf32>
    %46 = vector.multi_reduction <add>, %45, %cst_13 [1, 2] : vector<1x1x256xf32> to vector<1xf32>
    %47 = vector.shape_cast %46 : vector<1xf32> to vector<1x1x1xf32>
    %48 = vector.extract %47[0, 0, 0] : f32 from vector<1x1x1xf32>
    %49 = arith.extui %23 : vector<1x256xi1> to vector<1x256xi32>
    %50 = arith.sitofp %49 : vector<1x256xi32> to vector<1x256xf32>
    %51 = vector.shape_cast %50 : vector<1x256xf32> to vector<1x1x256xf32>
    %cst_14 = arith.constant dense<0.000000e+00> : vector<1xf32>
    %52 = vector.multi_reduction <add>, %51, %cst_14 [1, 2] : vector<1x1x256xf32> to vector<1xf32>
    %53 = vector.shape_cast %52 : vector<1xf32> to vector<1x1x1xf32>
    %54 = vector.extract %53[0, 0, 0] : f32 from vector<1x1x1xf32>
    %55 = tpu.iota {dimensions = array<i32: 1>} : vector<1x8x128xi32>
    %c0_i32_15 = arith.constant 0 : i32
    %56 = vector.broadcast %c0_i32_15 : i32 to vector<1x8x128xi32>
    %57 = arith.cmpi eq, %55, %56 : vector<1x8x128xi32>
    %c1_i32 = arith.constant 1 : i32
    %58 = vector.broadcast %c1_i32 : i32 to vector<1x8x128xi32>
    %59 = arith.cmpi eq, %55, %58 : vector<1x8x128xi32>
    %cst_16 = arith.constant 0.000000e+00 : f32
    %60 = vector.broadcast %54 : f32 to vector<1x8x128xf32>
    %61 = vector.broadcast %cst_16 : f32 to vector<1x8x128xf32>
    %62 = arith.select %59, %60, %61 : vector<1x8x128xi1>, vector<1x8x128xf32>
    %63 = vector.broadcast %48 : f32 to vector<1x8x128xf32>
    %64 = arith.select %57, %63, %62 : vector<1x8x128xi1>, vector<1x8x128xf32>
    %c0_17 = arith.constant 0 : index
    %c0_18 = arith.constant 0 : index
    %c0_19 = arith.constant 0 : index
    %65 = vector.load %arg4[%c0_17, %c0_18, %c0_19] : memref<1x8x128xf32, #tpu.memory_space<vmem>>, vector<1x8x128xf32>
    tpu.vector_store %arg4[%c0_17, %c0_18, %c0_19], %64 {strides = array<i32>} : memref<1x8x128xf32, #tpu.memory_space<vmem>>, vector<1x8x128xf32>,
    return
  }
  func.func @transform_0(%arg0: i32) -> (i32, i32) {
    %c0_i32 = arith.constant 0 : i32
    %c0_i32_0 = arith.constant 0 : i32
    %c0_i32_1 = arith.constant 0 : i32
    return %c0_i32, %c0_i32_0 : i32, i32
  }
  func.func @transform_1(%arg0: i32) -> (i32, i32) {
    %c0_i32 = arith.constant 0 : i32
    %c0_i32_0 = arith.constant 0 : i32
    return %arg0, %c0_i32 : i32, i32
  }
  func.func @transform_2(%arg0: i32) -> (i32, i32) {
    %c0_i32 = arith.constant 0 : i32
    %c0_i32_0 = arith.constant 0 : i32
    return %c0_i32, %arg0 : i32, i32
  }
  func.func @transform_3(%arg0: i32) -> (i32, i32, i32) {
    %c0_i32 = arith.constant 0 : i32
    %c0_i32_0 = arith.constant 0 : i32
    %c0_i32_1 = arith.constant 0 : i32
    return %arg0, %c0_i32, %c0_i32_0 : i32, i32, i32
  }
}

</mosaic_0001>

<bundles_post_ra>
// kernel: tpu_custom_call.1
= control target key start
LH: loop header
LB: loop body
LE: loop exit
PB: predicated region body
PF: predicated region fallthrough
CT: control target
= control target key end

     0   :  { %8 = vsyncpa [#allocation3], 0  ;;  %s1513_s0 = inlined_call_operand.vmem [shape: f32[8,32], index: 0, kind: input, shape index: {}]   ;;  %s1514_s1 = inlined_call_operand.vmem [shape: f32[512,32], index: 1, kind: input, shape index: {}]   ;;  %s1515_s2 = inlined_call_operand.vmem [shape: s32[1,512], index: 2, kind: input, shape index: {}]   ;;  %s1516_s3 = inlined_call_operand.hbm [shape: f32[2,8,128], index: 3, kind: output, shape index: {}]  }
   0x1   :  { %10 = vsyncpa [#allocation3 + $0x1], 0  ;;  %s1260_s12 = smov 0   ;;  %s1262_s13 = smov 0  }
   0x2   :  { %s1264_s14 = smov 0   ;;  %s1266_s15 = smov 0  }
   0x3 LB: > { %s1281_s16 = sadd.s32 4294967295, %s1233_s15   ;;  %s866_s17 = sadd.s32 4294967294, %s1233_s15   ;;  %s1233_s15 = sphi %s1266_s15, %s1526_s15   ;;  %s1229_s14 = sphi %s1264_s14, %s1525_s14   ;;  %s1225_s13 = sphi %s1262_s13, %s1524_s13   ;;  %s1221_s12 = sphi %s1260_s12, %s1523_s12  }
   0x4   : > { %s1285_s18 = sadd.s32 1, %s1233_s15   ;;  %s96_s19 = sadd.s32 1, %s1229_s14 }
   0x5   : > { %s93_s20 = ssub.s32 %s1233_s15, %s1285_s18  ;;  %p106_p0 = scmp.ne.s32.totalorder %s1229_s14, %s1225_s13 }
   0x6   : > { %p94_p1 = scmp.eq.s32.totalorder %s93_s20, 0  ;;  %p107_p2 = scmp.eq.s32.totalorder %s1281_s16, 1 }
   0x7   : > { %p112_p3 = scmp.ne.s32.totalorder %s1225_s13, %s1221_s12  ;;  %p113_p4 = scmp.eq.s32.totalorder %s866_s17, 1 }
   0x8   : > { %s1296_s21 = scalar_select %p94_p1, %s1229_s14, %s96_s19  }
   0x9   : > { %p1298_p5 = por %p107_p2, %p106_p0  ;;  %p1302_p6 = por %p113_p4, %p112_p3 }
   0xa   : > { %p869_p7 = scmp.ge.s32.totalorder %s1233_s15, 1  ;;  %p151_p8 = scmp.lt.s32.totalorder %s1233_s15, 3 }
   0xc   : > { %p152_p9 = pnand %p869_p7, %p151_p8 }
   0xd   : > { %s871_s24 = sshll.u32 (!%p152_p9), %s1281_s16, 5  ;;  %vm223_vm0 = vcmask (!%p152_p9), 261120   ;;  %v1312_v0 = vld [vmem:[%s1513_s0] sm:$0xff] (!%p152_p9)  ;;  %v1235_v1 = vmov (!%p152_p9), 1.0   ;;  %s940_s4 = sshll.u32 (!%p152_p9), %s1281_s16, 8  ;;  %vm739_vm9 = vcmask (!%p152_p9), 1040384  }
   0xe   : > { %155 = sbr.rel (%p152_p9) target bundleno = 616 (0x268), region = 32  ;;  %p180_p10 = scmp.lt.s32.totalorder (!%p152_p9), %s871_s24, 63  ;;  %1014 = vmatprep.mubr.msk.f32.mxu1 (!%p152_p9), %vm223_vm0, %v1235_v1  ;;  %980 = vmatprep.mubr.msk.f32.mxu0 (!%p152_p9), %vm223_vm0, %v1312_v0  ;;  %vm1331_vm1 = vmpackc.low (!%p152_p9), %vm223_vm0, %vm223_vm0 }
   0xf   : > { %s873_s5 = sshll.u32 (!%p152_p9), %s1281_s16, 1  ;;  %s176_s9 = sand.u32 (!%p152_p9), 1, %s1225_s13  }
  0x10   : > { %p186_p11 = scmp.lt.s32.totalorder (!%p152_p9), %s873_s5, 3  ;;  %s870_s10 = sshll.u32 (!%p152_p9), %s176_s9, 3 }
  0x11   : > { %s945_s11 = sshll.u32 (!%p152_p9), %s1281_s16, 7  ;;  %s178_s19 = scalar_lea.vmem (!%p152_p9), [#allocation2], %s870_s10 }
  0x12   : > { %s798_s20 = sshll.u32 (!%p152_p9), %s178_s19, 4  ;;  %s785_s16 = scalar_lea.sflag (!%p152_p9), [#allocation3], %s176_s9  ;;  %s1473_s20 = int_to_ptr.vmem [resolvable:$true] %s798_s20 }
  0x13   : > { %s1171_s28 = scalar_lea.vmem (!%p152_p9), %s1473_s20, 128  ;;  %s1239_s29 = smov (!%p152_p9), [#allocation2]  }
  0x14   : > { %p1172_p12 = scmp.ne.s32.totalorder (!%p152_p9), %s1473_s20, %s1171_s28 }
  0x15   : > { %s1528_s24 = smov (!%p180_p10, %s871_s24), 63  ;;  %s1530_s5 = smov (!%p186_p11, %s873_s5), 3 }
  0x16   : > { %s872_s27 = sshll.u32 %s1528_s24, 3  ;;  %s188_s8 = scalar_lea.vmem %s1515_s2, %s1530_s5 }
  0x17   : > { %s1321_s30 = scalar_lea.vmem %s1514_s1, %s872_s27  ;;  %s1471_s27 = scalar_lea.hbm %s1516_s3, %s945_s11 }
  0x18   : > { %v206_v2 = vld [vmem:[%s1321_s30 + $0x80] sm:$0xff]  ;;  %v207_v3 = vld [vmem:[%s1321_s30 + $0x88] sm:$0xff]  ;;  %v208_v9 = vld [vmem:[%s1321_s30 + $0x90] sm:$0xff]  ;;  %p1173_p13 = pnand %p1172_p12, %p1298_p5 }
  0x19   : > { %v190_v4 = vld [vmem:[%s1321_s30] sm:$0xff]  ;;  %v410_v5 = vmul.f32 %v206_v2, %v206_v2  ;;  %v411_v6 = vmul.f32 %v207_v3, %v207_v3  ;;  %v191_v7 = vld [vmem:[%s1321_s30 + $0x8] sm:$0xff]  ;;  %v209_v10 = vld [vmem:[%s1321_s30 + $0x98] sm:$0xff]  ;;  %v1016_v11 = vpack.c.bf16 %v207_v3, %v206_v2  ;;  %v412_v14 = vmul.f32 %v208_v9, %v208_v9 }
  0x1a   : > { %v394_v8 = vmul.f32 %v190_v4, %v190_v4  ;;  %v395_v13 = vmul.f32 %v191_v7, %v191_v7  ;;  %v413_v15 = vmul.f32 %v209_v10, %v209_v10  ;;  %v1019_v16 = vpack.c.bf16 %v191_v7, %v190_v4  ;;  %v192_v18 = vld [vmem:[%s1321_s30 + $0x10] sm:$0xff]  ;;  %v193_v19 = vld [vmem:[%s1321_s30 + $0x18] sm:$0xff]  ;;  %v210_v22 = vld [vmem:[%s1321_s30 + $0xa0] sm:$0xff]  ;;  %p1174_p0 = pneg %p1173_p13 }
  0x1b   : > { %v1064_v17 = vpack.c.bf16 %v411_v6, %v410_v5  ;;  %1018 = vmatprep.subr.msk.bf16.mxu0 %vm1331_vm1, %v1016_v11  ;;  %v211_v23 = vld [vmem:[%s1321_s30 + $0xa8] sm:$0xff]  ;;  %v1022_v24 = vpack.c.bf16 %v209_v10, %v208_v9  ;;  %v396_v25 = vmul.f32 %v192_v18, %v192_v18  ;;  %v397_v26 = vmul.f32 %v193_v19, %v193_v19  ;;  %v194_v33 = vld [vmem:[%s1321_s30 + $0x20] sm:$0xff]  ;;  %v212_v35 = vld [vmem:[%s1321_s30 + $0xb0] sm:$0xff] }
  0x1c   : > { %v1067_v20 = vpack.c.bf16 %v395_v13, %v394_v8  ;;  %v1070_v21 = vpack.c.bf16 %v413_v15, %v412_v14  ;;  %1021 = vmatpush3.bf16.xpose.msk.msra.mxu0 %vm1331_vm1, %v1019_v16  ;;  %v414_v27 = vmul.f32 %v210_v22, %v210_v22  ;;  %v415_v28 = vmul.f32 %v211_v23, %v211_v23  ;;  %v195_v34 = vld [vmem:[%s1321_s30 + $0x28] sm:$0xff]  ;;  %v213_v36 = vld [vmem:[%s1321_s30 + $0xb8] sm:$0xff]  ;;  %v196_v45 = vld [vmem:[%s1321_s30 + $0x30] sm:$0xff] }
  0x1d   : > { %1066 = vmatprep.subr.msk.bf16.mxu1 %vm1331_vm1, %v1064_v17  ;;  %1024 = vmatprep.subr.msk.bf16.mxu0 %vm1331_vm1, %v1022_v24  ;;  %v1025_v29 = vpack.c.bf16 %v193_v19, %v192_v18  ;;  %v1028_v30 = vpack.c.bf16 %v211_v23, %v210_v22  ;;  %v1073_v31 = vpack.c.bf16 %v397_v26, %v396_v25  ;;  %v197_v46 = vld [vmem:[%s1321_s30 + $0x38] sm:$0xff]  ;;  %v214_v47 = vld [vmem:[%s1321_s30 + $0xc0] sm:$0xff]  ;;  %v215_v48 = vld [vmem:[%s1321_s30 + $0xc8] sm:$0xff] }
  0x1e   : > { %1069 = vmatpush3.bf16.xpose.msk.msra.mxu1 %vm1331_vm1, %v1067_v20  ;;  %v1076_v32 = vpack.c.bf16 %v415_v28, %v414_v27  ;;  %v398_v37 = vmul.f32 %v194_v33, %v194_v33  ;;  %v399_v38 = vmul.f32 %v195_v34, %v195_v34  ;;  %v416_v39 = vmul.f32 %v212_v35, %v212_v35  ;;  %v198_v57 = vld [vmem:[%s1321_s30 + $0x40] sm:$0xff]  ;;  %v199_v58 = vld [vmem:[%s1321_s30 + $0x48] sm:$0xff]  ;;  %v216_v59 = vld [vmem:[%s1321_s30 + $0xd0] sm:$0xff] }
  0x1f   : > { %1072 = vmatprep.subr.msk.bf16.mxu1 %vm1331_vm1, %v1070_v21  ;;  %v417_v40 = vmul.f32 %v213_v36, %v213_v36  ;;  %v1031_v41 = vpack.c.bf16 %v195_v34, %v194_v33  ;;  %v1034_v42 = vpack.c.bf16 %v213_v36, %v212_v35  ;;  %v400_v49 = vmul.f32 %v196_v45, %v196_v45  ;;  %v217_v60 = vld [vmem:[%s1321_s30 + $0xd8] sm:$0xff]  ;;  %v200_v7 = vld [vmem:[%s1321_s30 + $0x50] sm:$0xff]  ;;  %v218_v9 = vld [vmem:[%s1321_s30 + $0xe0] sm:$0xff] }
  0x20   : > { %v1079_v43 = vpack.c.bf16 %v399_v38, %v398_v37  ;;  %v401_v50 = vmul.f32 %v197_v46, %v197_v46  ;;  %v418_v51 = vmul.f32 %v214_v47, %v214_v47  ;;  %v419_v52 = vmul.f32 %v215_v48, %v215_v48  ;;  %v201_v8 = vld [vmem:[%s1321_s30 + $0x58] sm:$0xff]  ;;  %v219_v10 = vld [vmem:[%s1321_s30 + $0xe8] sm:$0xff]  ;;  %v202_v20 = vld [vmem:[%s1321_s30 + $0x60] sm:$0xff] }
  0x21   : > { %v1082_v44 = vpack.c.bf16 %v417_v40, %v416_v39  ;;  %v1037_v53 = vpack.c.bf16 %v197_v46, %v196_v45  ;;  %v1040_v54 = vpack.c.bf16 %v215_v48, %v214_v47  ;;  %v402_v61 = vmul.f32 %v198_v57, %v198_v57  ;;  %v203_v21 = vld [vmem:[%s1321_s30 + $0x68] sm:$0xff]  ;;  %v220_v22 = vld [vmem:[%s1321_s30 + $0xf0] sm:$0xff]  ;;  %v221_v23 = vld [vmem:[%s1321_s30 + $0xf8] sm:$0xff] }
  0x22   : > { %v1085_v55 = vpack.c.bf16 %v401_v50, %v400_v49  ;;  %v1088_v56 = vpack.c.bf16 %v419_v52, %v418_v51  ;;  %v403_v62 = vmul.f32 %v199_v58, %v199_v58  ;;  %v420_v63 = vmul.f32 %v216_v59, %v216_v59  ;;  %v205_v33 = vld [vmem:[%s1321_s30 + $0x78] sm:$0xff] }
  0x23   : > { %v421_v2 = vmul.f32 %v217_v60, %v217_v60  ;;  %v1043_v3 = vpack.c.bf16 %v199_v58, %v198_v57  ;;  %v1046_v4 = vpack.c.bf16 %v217_v60, %v216_v59  ;;  %v404_v11 = vmul.f32 %v200_v7, %v200_v7 }
  0x24   : > { %1027 = vmatpush3.bf16.xpose.msk.msra.mxu0 %vm1331_vm1, %v1025_v29  ;;  %v1091_v5 = vpack.c.bf16 %v403_v62, %v402_v61  ;;  %v405_v13 = vmul.f32 %v201_v8, %v201_v8  ;;  %v422_v14 = vmul.f32 %v218_v9, %v218_v9  ;;  %v423_v15 = vmul.f32 %v219_v10, %v219_v10 }
  0x25   : > { %1030 = vmatprep.subr.msk.bf16.mxu0 %vm1331_vm1, %v1028_v30  ;;  %v1094_v6 = vpack.c.bf16 %v421_v2, %v420_v63  ;;  %v1049_v16 = vpack.c.bf16 %v201_v8, %v200_v7  ;;  %v1052_v17 = vpack.c.bf16 %v219_v10, %v218_v9  ;;  %v406_v24 = vmul.f32 %v202_v20, %v202_v20  ;;  %v612_v10 = vld [vmem:[%s188_s8] sm:$0x3] }
  0x26   : > { %1075 = vmatpush3.bf16.xpose.msk.msra.mxu1 %vm1331_vm1, %v1073_v31  ;;  %v1097_v18 = vpack.c.bf16 %v405_v13, %v404_v11  ;;  %v1100_v19 = vpack.c.bf16 %v423_v15, %v422_v14  ;;  %v407_v25 = vmul.f32 %v203_v21, %v203_v21  ;;  %v424_v26 = vmul.f32 %v220_v22, %v220_v22 }
  0x27   : > { %1078 = vmatprep.subr.msk.bf16.mxu1 %vm1331_vm1, %v1076_v32  ;;  %v425_v27 = vmul.f32 %v221_v23, %v221_v23  ;;  %v1055_v28 = vpack.c.bf16 %v203_v21, %v202_v20  ;;  %v1058_v29 = vpack.c.bf16 %v221_v23, %v220_v22  ;;  %v204_v32 = vld [vmem:[%s1321_s30 + $0x70] sm:$0xff]  ;;  %v409_v35 = vmul.f32 %v205_v33, %v205_v33  ;;  %s1175_s30 = sshll.u32 %s1239_s29, 4  ;;  %s1176_s30 = int_to_ptr.vmem [resolvable:$false] %s1175_s30 }
  0x28   : > { %v1103_v30 = vpack.c.bf16 %v407_v25, %v406_v24  ;;  %v408_v34 = vmul.f32 %v204_v32, %v204_v32  ;;  %v1061_v36 = vpack.c.bf16 %v205_v33, %v204_v32  ;;  %v602_v38 = vlaneseq  ;;  %p1178_p1 = scmp.lt.s32.totalorder %s1473_s20, %s1176_s30 }
  0x29   : > { %v1106_v31 = vpack.c.bf16 %v425_v27, %v424_v26  ;;  %v617_v47 = vstv %s940_s4  ;;  %v1237_v52 = vmov 0   ;;  %vm622_vm4 = vcmp.ne.s32.totalorder %v612_v10, 255  ;;  %s1177_s4 = scalar_lea.vmem %s1176_s30, 256 }
  0x2a   : > { %v1109_v37 = vpack.c.bf16 %v409_v35, %v408_v34  ;;  %v614_v39 = vand.u32 127, %v602_v38  ;;  %v1430_v50 = vshrl.u32 %v602_v38, 7  ;;  %p1179_p2 = scmp.lt.s32.totalorder %s1177_s4, %s1171_s28 }
  0x2c   : > { %1033 = vmatpush3.bf16.xpose.msk.msra.mxu0 %vm1331_vm1, %v1031_v41  ;;  %v615_v45 = vadd.s32 128, %v614_v39  ;;  %v618_v12 = vadd.s32 %v617_v47, %v614_v39  ;;  %v1434_v51 = vsub.s32 0, %v1430_v50  ;;  %v685_v23 = vsub.s32 1, %v1430_v50  ;;  %p1180_p3 = por %p1179_p2, %p1178_p1 }
  0x2d   : > { %1036 = vmatprep.subr.msk.bf16.mxu0 %vm1331_vm1, %v1034_v42  ;;  %vm778_vm10 = vcmp.eq.s32.totalorder %v1430_v50, 1  ;;  %vm777_vm11 = vcmp.eq.s32.totalorder %v1430_v50, 0 }
  0x2e   : > { %1081 = vmatpush3.bf16.xpose.msk.msra.mxu1 %vm1331_vm1, %v1079_v43  ;;  %v619_v48 = vadd.s32 %v617_v47, %v615_v45  ;;  %vm620_vm2 = vcmp.lt.s32.totalorder %v618_v12, 512  ;;  %p1181_p4 = pnand %p1180_p3, %p1174_p0 }
  0x2f   : > { %1084 = vmatprep.subr.msk.bf16.mxu1 %vm1331_vm1, %v1082_v44 }
  0x30   : > { %vm621_vm3 = vcmp.lt.s32.totalorder %v619_v48, 512 }
  0x34   : > { %1039 = vmatpush3.bf16.xpose.msk.msra.mxu0 %vm1331_vm1, %v1037_v53  ;;  %v623_v53 = vsel %vm620_vm2, 1, %v1237_v52 }
  0x35   : > { %1042 = vmatprep.subr.msk.bf16.mxu0 %vm1331_vm1, %v1040_v54  ;;  %v624_v54 = vsel %vm621_vm3, 1, %v1237_v52 }
  0x36   : > { %1087 = vmatpush3.bf16.xpose.msk.msra.mxu1 %vm1331_vm1, %v1085_v55  ;;  %v625_v59 = vcombine.low %v623_v53, %v624_v54 }
  0x37   : > { %1090 = vmatprep.subr.msk.bf16.mxu1 %vm1331_vm1, %v1088_v56 }
  0x3c   : > { %1045 = vmatpush3.bf16.xpose.msk.msra.mxu0 %vm1331_vm1, %v1043_v3 }
  0x3d   : > { %1048 = vmatprep.subr.msk.bf16.mxu0 %vm1331_vm1, %v1046_v4 }
  0x3e   : > { %1093 = vmatpush3.bf16.xpose.msk.msra.mxu1 %vm1331_vm1, %v1091_v5 }
  0x3f   : > { %1096 = vmatprep.subr.msk.bf16.mxu1 %vm1331_vm1, %v1094_v6 }
  0x44   : > { %1051 = vmatpush3.bf16.xpose.msk.msra.mxu0 %vm1331_vm1, %v1049_v16 }
  0x45   : > { %1054 = vmatprep.subr.msk.bf16.mxu0 %vm1331_vm1, %v1052_v17 }
  0x46   : > { %1099 = vmatpush3.bf16.xpose.msk.msra.mxu1 %vm1331_vm1, %v1097_v18 }
  0x47   : > { %1102 = vmatprep.subr.msk.bf16.mxu1 %vm1331_vm1, %v1100_v19 }
  0x4c   : > { %1057 = vmatpush3.bf16.xpose.msk.msra.mxu0 %vm1331_vm1, %v1055_v28  ;;  %v1238_v28 = vmov 0.0  }
  0x4d   : > { %1060 = vmatprep.subr.msk.bf16.mxu0 %vm1331_vm1, %v1058_v29 }
  0x4e   : > { %1105 = vmatpush3.bf16.xpose.msk.msra.mxu1 %vm1331_vm1, %v1103_v30 }
  0x4f   : > { %1108 = vmatprep.subr.msk.bf16.mxu1 %vm1331_vm1, %v1106_v31 }
  0x54   : > { %1063 = vmatpush3.bf16.xpose.msk.msra.mxu0 %vm1331_vm1, %v1061_v36 }
  0x56   : > { %1111 = vmatpush3.bf16.xpose.msk.msra.mxu1 %vm1331_vm1, %v1109_v37 }
  0x5b   : > { %981 = vmatmul.mubr.msk.f32.vlgmr.msra.gmra.mrb[0].mxu0 %vm223_vm0, %v1312_v0  ;;  %v1236_v0 = vmov 1966171168  }
  0x5c   : > { %v627_v49 = vunpack.c.l.s4 %v1236_v0 }
  0x5d   : > { %1015 = vmatmul.mubr.msk.f32.vlgmr.msra.gmra.mrb[0].mxu1 %vm223_vm0, %v1235_v1 }
  0x5e   : > { %v628_v1 = vunpack.c.0.s8 %v627_v49 }
  0x60   : > { %v1437_v60 = vsub.s32 %v628_v1, %v1430_v50 }
  0x62   : > { %v632_v3 = vrot.slane %v625_v59, %v1437_v60 }
  0x64   : > { %v639_v8 = vrot.slane %v632_v3, %v1437_v60 }
  0x66   : > { %vm640_vm5 = vcmp.ne.s32.totalorder %v639_v8, 0 }
  0x67   : > { %vm1446_vm6 = vmand %vm622_vm4, %vm640_vm5 }
  0x68   : > { %v642_v22 = vsel %vm1446_vm6, %v612_v10, 0 }
  0x69   : > { %v682_v26 = vrot.slane %v642_v22, %v1434_v51  ;;  %v686_v27 = vrot.slane %v642_v22, %v685_v23 }
  0x6b   : > { %vm687_vm7 = vcmp.eq.s32.totalorder %v1430_v50, %v682_v26  ;;  %vm688_vm8 = vcmp.eq.s32.totalorder %v1430_v50, %v686_v27 }
  0x6c   : > { %v941_v29 = vsel %vm687_vm7, 1.0, %v1238_v28  ;;  %v942_v30 = vsel %vm688_vm8, 1.0, %v1238_v28 }
 0x12e   : > { %v389_v40 = vpop.f32.mrb[0].mxu0 }
 0x12f   : > { %v391_v41 = vpop.f32.mrb[1].mxu0 }
 0x130   : > { %v591_v42 = vpop.f32.mrb[0].mxu1 }
 0x131   : > { %v596_v43 = vmax.f32 %v591_v42, 1e-24  ;;  %v593_v44 = vpop.f32.mrb[1].mxu1 }
 0x132   : > { %v597_v46 = vmax.f32 %v593_v44, 1e-24 }
 0x133   : > { %1159 = vrsqrt.f32 %v596_v43 }
 0x134   : > { %1161 = vrsqrt.f32 %v597_v46 }
 0x13d   : > { %v1160_v55 = vpop.eup %1159 }
 0x13e   : > { %v1162_v56 = vpop.eup %1161  ;;  %v600_v57 = vmul.f32 10.0, %v1160_v55 }
 0x13f   : > { %v601_v58 = vmul.f32 10.0, %v1162_v56 }
 0x140   : > { %v605_v61 = vrot.slane %v600_v57, %v1434_v51 }
 0x141   : > { %v609_v62 = vrot.slane %v601_v58, %v1434_v51 }
 0x142   : > { %v610_v63 = vmul.f32 %v605_v61, %v389_v40 }
 0x143   : > { %v611_v2 = vmul.f32 %v609_v62, %v391_v41 }
 0x144   : > { %v643_v4 = vrot.slane %v610_v63, 4 }
 0x145   : > { %v649_v5 = vrot.slane %v611_v2, 4 }
 0x146   : > { %v644_v6 = vmax.f32 %v610_v63, %v643_v4 }
 0x147   : > { %v650_v7 = vmax.f32 %v611_v2, %v649_v5  ;;  %v943_v5 = vsel %vm1446_vm6, 1.0, %v1238_v28 }
 0x148   : > { %v645_v9 = vrot.slane %v644_v6, 2  ;;  %v762_v8 = vrot.slane %v943_v5, %v685_v23 }
 0x149   : > { %v651_v11 = vrot.slane %v650_v7, 2 }
 0x14a   : > { %v646_v13 = vmax.f32 %v644_v6, %v645_v9 }
 0x14b   : > { %v652_v14 = vmax.f32 %v650_v7, %v651_v11  ;;  %v758_v7 = vrot.slane %v943_v5, %v1434_v51 }
 0x14c   : > { %v647_v15 = vrot.slane %v646_v13, 1 }
 0x14d   : > { %v653_v16 = vrot.slane %v652_v14, 1 }
 0x14e   : > { %v648_v17 = vmax.f32 %v646_v13, %v647_v15  ;;  %v765_v15 = vsel %vm739_vm9, %v758_v7, 0.0 }
 0x14f   : > { %v654_v19 = vmax.f32 %v652_v14, %v653_v16  ;;  %v766_v16 = vsel %vm739_vm9, %v762_v8, 0.0 }
 0x150   : > { %v655_v20 = vsub.f32 %v610_v63, %v648_v17 }
 0x151   : > { %v656_v21 = vsub.f32 %v611_v2, %v654_v19  ;;  %v767_v19 = vadd.f32 %v766_v16, %v765_v15 }
 0x152   : > { %v657_v24 = vmul.f32 1.442695, %v655_v20  ;;  %v693_v32 = vmul.f32 %v941_v29, %v655_v20 }
 0x153   : > { %v659_v25 = vmul.f32 1.442695, %v656_v21  ;;  %v694_v35 = vmul.f32 %v942_v30, %v656_v21 }
 0x154   : > { %1163 = vpow2.f32 %v657_v24  ;;  %v695_v39 = vrot.slane %v693_v32, 4 }
 0x155   : > { %1165 = vpow2.f32 %v659_v25  ;;  %v701_v41 = vrot.slane %v694_v35, 4 }
 0x156   : > { %v696_v45 = vadd.f32 %v695_v39, %v693_v32 }
 0x157   : > { %v702_v47 = vadd.f32 %v701_v41, %v694_v35 }
 0x158   : > { %v697_v49 = vrot.slane %v696_v45, 2 }
 0x159   : > { %v703_v1 = vrot.slane %v702_v47, 2 }
 0x15a   : > { %v698_v52 = vadd.f32 %v697_v49, %v696_v45 }
 0x15b   : > { %v704_v53 = vadd.f32 %v703_v1, %v702_v47 }
 0x15c   : > { %v699_v54 = vrot.slane %v698_v52, 1 }
 0x15d   : > { %v705_v55 = vrot.slane %v704_v53, 1 }
 0x15e   : > { %v1164_v31 = vpop.eup %1163  ;;  %v700_v59 = vadd.f32 %v699_v54, %v698_v52 }
 0x15f   : > { %v1166_v33 = vpop.eup %1165  ;;  %v661_v34 = vrot.slane %v1164_v31, 4  ;;  %v706_v62 = vadd.f32 %v705_v55, %v704_v53 }
 0x160   : > { %v667_v36 = vrot.slane %v1166_v33, 4 }
 0x161   : > { %v662_v37 = vadd.f32 %v1164_v31, %v661_v34 }
 0x162   : > { %v668_v38 = vadd.f32 %v1166_v33, %v667_v36 }
 0x163   : > { %v663_v40 = vrot.slane %v662_v37, 2 }
 0x164   : > { %v669_v42 = vrot.slane %v668_v38, 2 }
 0x165   : > { %v664_v43 = vadd.f32 %v663_v40, %v662_v37 }
 0x166   : > { %v670_v44 = vadd.f32 %v669_v42, %v668_v38 }
 0x167   : > { %v665_v46 = vrot.slane %v664_v43, 1 }
 0x168   : > { %v671_v12 = vrot.slane %v670_v44, 1 }
 0x169   : > { %v666_v48 = vadd.f32 %v665_v46, %v664_v43 }
 0x16a   : > { %v672_v0 = vadd.f32 %v671_v12, %v670_v44 }
 0x16b   : > { %1167 = vlog2.f32 %v666_v48 }
 0x16c   : > { %1169 = vlog2.f32 %v672_v0 }
 0x175   : > { %v1168_v56 = vpop.eup %1167 }
 0x176   : > { %v1170_v57 = vpop.eup %1169  ;;  %v674_v58 = vmul.f32 0.6931472, %v1168_v56 }
 0x177   : > { %v676_v61 = vmul.f32 0.6931472, %v1170_v57 }
 0x178   : > { %v707_v63 = vsub.f32 %v674_v58, %v700_v59 }
 0x179   : > { %v708_v2 = vsub.f32 %v676_v61, %v706_v62 }
 0x17b   : > { %v711_v3 = vcombine.low %v707_v63, %v708_v2 }
 0x17d   : > { %v718_v4 = vrot.slane %v711_v3, %v1437_v60 }
 0x17f   : > { %v725_v6 = vrot.slane %v718_v4, %v1437_v60 }
 0x181   : > { %v727_v9 = vsel %vm1446_vm6, %v725_v6, 0.0 }
 0x182   : > { %v732_v10 = vrot.slane %v727_v9, %v1434_v51  ;;  %v736_v11 = vrot.slane %v727_v9, %v685_v23 }
 0x184   : > { %v740_v13 = vsel %vm739_vm9, %v732_v10, 0.0  ;;  %v741_v14 = vsel %vm739_vm9, %v736_v11, 0.0 }
 0x185   : > { %v742_v17 = vadd.f32 %v741_v14, %v740_v13 }
 0x187   : > { %743 = vadd.xlane.f32.xlu0 %v742_v17 }
 0x18b   : > { %768 = vadd.xlane.f32.xlu0 %v767_v19 }
 0x214   : > { %v744_v20 = vpop.xlane.xlu0 %743 }
 0x215   : > { %v745_v60 = vrot.slane %v744_v20, 4 }
 0x217   : > { %v746_v21 = vadd.f32 %v745_v60, %v744_v20 }
 0x218   : > { %v769_v22 = vpop.xlane.xlu0 %768 }
 0x219   : > { %v747_v18 = vrot.slane %v746_v21, 2  ;;  %v770_v24 = vrot.slane %v769_v22, 4 }
 0x21b   : > { %v771_v25 = vadd.f32 %v770_v24, %v769_v22  ;;  %v748_v26 = vadd.f32 %v747_v18, %v746_v21 }
 0x21d   : > { %v772_v51 = vrot.slane %v771_v25, 2  ;;  %v749_v23 = vrot.slane %v748_v26, 1 }
 0x21f   : > { %v773_v27 = vadd.f32 %v772_v51, %v771_v25  ;;  %v750_v28 = vadd.f32 %v749_v23, %v748_v26 }
 0x221   : > { %1112 = vpush %v750_v28  ;;  %v774_v29 = vrot.slane %v773_v27, 1 }
 0x223   : > { %v775_v30 = vadd.f32 %v774_v29, %v773_v27 }
 0x225   : > { %1114 = vpush %v775_v30 }
 0x252   : > { %s1113_s17 = spop %1112 }
 0x253   : > { %v781_v32 = vstv %s1113_s17 }
 0x256   : > { %s1115_s24 = spop %1114 }
 0x257   : > { %v779_v31 = vstv %s1115_s24 }
 0x258   : > { %v780_v33 = vsel %vm778_vm10, %v779_v31, 0.0 }
 0x259   : > { %v782_v34 = vsel %vm777_vm11, %v781_v32, %v780_v33 }
 0x25a   : > { %783 = vst [vmem:[%s178_s19] sm:$0xff] %v782_v34 }
 0x25b   : > { %1184 = shalt.err (!%p1181_p4)
}
 0x25c   : > { %s1185_s5 = scalar_lea.hbm %s1471_s27, 128  ;;  %s1189_s8 = scalar_lea.hbm %s1516_s3, 256 }
 0x25d   : > { %p1186_p7 = scmp.ne.s32.totalorder %s1471_s27, %s1185_s5  ;;  %p1190_p10 = scmp.lt.u32.totalorder %s1471_s27, %s1516_s3 }
 0x25e   : > { %p1191_p11 = scmp.lt.u32.totalorder %s1189_s8, %s1185_s5  ;;  %p1193_p13 = scmp.lt.u32.totalorder %s1185_s5, %s1471_s27 }
 0x25f   : > { %p1187_p8 = pnand %p1186_p7, %p1298_p5 }
 0x260   : > { %p1192_p12 = por %p1191_p11, %p1190_p10 }
 0x261   : > { %p1188_p9 = pneg %p1187_p8 }
 0x262   : > { %p1194_p0 = por %p1193_p13, %p1192_p12 }
 0x264   : > { %p1195_p1 = pnand %p1194_p0, %p1188_p9 }
 0x266   : > { %1198 = shalt.err (!%p1195_p1)
}
 0x267   : > { %1116 = dma.vmem_to_hbm [thread:$0]  (%p1298_p5), %s1473_s20, 128, %s1471_s27, %s785_s16  }
 0x268 PF: > { %p1122_p2 = scmp.ge.s32.totalorder %s1233_s15, 2  ;;  %s810_s11 = sand.u32 1, %s1221_s12  }
 0x269   : > { %s811_s17 = scalar_lea.sflag [#allocation3], %s810_s11 }
 0x26a   : > { %p1119_p3 = pnand %p1122_p2, %p1302_p6 }
 0x26c   : > { %1216 = dma.done.wait (!%p1119_p3), %s811_s17, 128  }
 0x26d   : > { %1218 = vsyncadd (!%p1119_p3), %s811_s17, 4294967168  ;;  %p13_p4 = scmp.ge.s32.totalorder %s1285_s18, 4   ;;  %s1523_s12 = smov %s1225_s13 }
 0x26e   : > { %s1524_s13 = smov %s1229_s14  ;;  %s1525_s14 = smov %s1296_s21 }
 0x26f   : > { %s1526_s15 = smov %s1285_s18  ;;  %15 = sbr.rel (!%p13_p4) target bundleno = 3 (0x3), region = 70 }
 0x276   :  { %816 = vsyncpa [#allocation3], 1 }
 0x277   :  { %818 = vsyncpa [#allocation3 + $0x1], 1 }

</bundles_post_ra>
